<compile_context>
chip_gen: v5e
topology: v5e:2x2
jax: 0.10.0
libtpu: 0.0.40
codegen_flags: <defaults>
</compile_context>

<pallas_src>
import math

import jax
import jax.numpy as jnp
from jax.experimental import pallas as pl
from jax.experimental.pallas import tpu as pltpu

# Keep host-side matmuls (weight folding, reference) f32-exact so the folded
# kernel can be checked against the transliteration tightly.
jax.config.update("jax_default_matmul_precision", "highest")


# ---------------------------------------------------------------------------
# Pallas kernel: fused cross-modal projection + folded attention-scores path
# + feature re-weighting.
# ---------------------------------------------------------------------------
def _summarizer_kernel(bias_ref, x_ref, wproj_ref, wrow_ref,
                       fused_ref, weighted_ref, scores_ref):
    x = x_ref[...]                                        # [TS, Dv] f32 (VMEM tile)

    # Cross-modal projection on the (otherwise idle) MXU — fusing the upstream
    # einsum removes a full HBM round-trip of the fused tensor.
    fused = jnp.dot(x, wproj_ref[...],
                    preferred_element_type=jnp.float32)  # [TS, D]
    fused_ref[...] = fused

    # Folded linear attention chain as a VPU multiply + cross-lane reduce —
    # avoids an N=1 MXU matvec that would occupy the systolic array for a
    # 1-lane result.
    logits = jnp.sum(fused * wrow_ref[...], axis=-1,
                     keepdims=True) + bias_ref[0, 0]      # [TS, 1]

    # Sigmoid (exact form keeps the 2e-5 reference check below tight).
    sc = pl.reciprocal(1.0 + jnp.exp(-logits), approx=False)  # [TS, 1]

    # Scores: tiny [TS, 1] payload — no lane-broadcast slab, no wrapper slice.
    scores_ref[...] = sc
    # Summarizer: weighted_features = fused * scores.view(-1, 1, 1)
    weighted_ref[...] = fused * sc                            # [TS, D]


# ---------------------------------------------------------------------------
# Parameter folding (done once at setup, NOT per call).
# ---------------------------------------------------------------------------
def fold_attention_params(params, hidden):
    """Fold the degenerate (batch==1, eval-dropout) attention path into one
    row-vector weight and a scalar bias:  logits = x @ w_row.T + bias."""
    D = hidden
    w_v = params["w_kqv"][2 * D:3 * D, :]                     # v = x @ w_v.T
    w_row = params["w_out"] @ params["w_hp"] @ w_v            # [1, D]
    bias = (params["b_hp"] @ params["w_out"].T + params["b_out"]).reshape(1, 1)
    return {"w_attn_row": w_row.astype(jnp.float32),
            "b_attn": bias.astype(jnp.float32)}


# ---------------------------------------------------------------------------
# Tile / VMEM sizing (generation-aware).
# ---------------------------------------------------------------------------
def _vmem_capacity_bytes():
    try:
        return int(pltpu.get_tpu_info().vmem_capacity_bytes)
    except Exception:
        return 64 << 20          # conservative (v7x); v5e / v6e have 128 MiB


def _choose_tile(S, d_in, d_hid, vmem_cap_bytes):
    """D-aware sequence tile: a few MiB of traffic per grid step (amortizes the
    ~0.35 us per-step overhead), double-buffered working set well inside this
    generation's VMEM, multiple of 8 sublanes."""
    per_row = 4 * (d_in + 2 * d_hid + 1)        # x + fused + weighted + score (f32)
    budget_rows = int(0.40 * vmem_cap_bytes) // (2 * per_row)   # double-buffered
    target_rows = (4 << 20) // per_row                          # ~4 MiB per step
    ts = max(8, min(budget_rows, target_rows))
    if S >= 8:
        ts = min(ts, (S // 8) * 8)
        # v7x megacore: if one tile would swallow a large sequence, split it so
        # the "parallel" grid axis shards across both TensorCores.
        if pl.cdiv(S, ts) == 1 and S >= 2048:
            ts = ((pl.cdiv(S, 2) + 7) // 8) * 8
        ts = max(8, (ts // 8) * 8)
    else:
        ts = S                                   # tiny sequence: one full block
    return ts


def _vmem_limit_bytes(ts, d_in, d_hid, vmem_cap_bytes):
    per_row = 4 * (d_in + 2 * d_hid + 1)
    resident = 4 * (d_in * d_hid + d_hid)        # VMEM-resident weights
    demand = 2 * ts * per_row + resident + (1 << 20)   # double-buffered + headroom
    cap = int(0.75 * vmem_cap_bytes)             # ~48 MiB on v7x, ~96 MiB on v5e/v6e
    return int(min(max(demand, 4 << 20), cap))


# ---------------------------------------------------------------------------
# pallas_call wrapper.
# ---------------------------------------------------------------------------
def _fused_attn_pallas(video2d, w_vproj, w_row, bias):
    """video2d: [S, Dv] f32.  Returns (fused [S,D], weighted [S,D], scores [S,1])."""
    S, Dv = video2d.shape
    Dh = w_vproj.shape[1]

    cap = _vmem_capacity_bytes()
    ts = _choose_tile(S, Dv, Dh, cap)
    grid = (pl.cdiv(S, ts),)                     # partial last block is masked
    vmem_limit = _vmem_limit_bytes(ts, Dv, Dh, cap)

    fused, weighted, scores = pl.pallas_call(
        _summarizer_kernel,
        grid=grid,
        in_specs=[
            pl.BlockSpec(memory_space=pltpu.MemorySpace.SMEM),   # folded bias (1,1)
            pl.BlockSpec((ts, Dv), lambda i: (i, 0)),            # video tile
            pl.BlockSpec((Dv, Dh), lambda i: (0, 0)),            # w_vproj (VMEM-resident)
            pl.BlockSpec((1, Dh), lambda i: (0, 0)),             # folded weight row
        ],
        out_specs=(
            pl.BlockSpec((ts, Dh), lambda i: (i, 0)),            # fused features
            pl.BlockSpec((ts, Dh), lambda i: (i, 0)),            # weighted features
            pl.BlockSpec((ts, 1), lambda i: (i, 0)),             # scores [S,1]
        ),
        out_shape=(
            jax.ShapeDtypeStruct((S, Dh), jnp.float32),
            jax.ShapeDtypeStruct((S, Dh), jnp.float32),
            jax.ShapeDtypeStruct((S, 1), jnp.float32),
        ),
        compiler_params=pltpu.CompilerParams(
            dimension_semantics=("parallel",),
            vmem_limit_bytes=vmem_limit,
        ),
    )(bias, video2d.astype(jnp.float32), w_vproj.astype(jnp.float32),
      w_row.astype(jnp.float32))

    return fused, weighted, scores


# ---------------------------------------------------------------------------
# Pure-JAX transliteration of the full PyTorch MultiHeadSelfAttention (eval mode)
# — used to verify that the folded kernel matches the un-folded math.
# ---------------------------------------------------------------------------
def _attn_reference(fused, params, num_heads):
    S, B, D = fused.shape
    dk = D // num_heads
    kqv = jnp.einsum("sbd,ed->sbe", fused, params["w_kqv"])          # [S, B, 3D]
    k, q, v = jnp.split(kqv, 3, axis=-1)
    k = k.reshape(S, num_heads, -1, dk)
    q = q.reshape(S, num_heads, -1, dk)
    v = v.reshape(S, num_heads, -1, dk)
    scores = jnp.matmul(q, jnp.swapaxes(k, -1, -2)) / math.sqrt(dk)  # [S, H, B, B]
    scores = jax.nn.softmax(scores, axis=-1)
    out = jnp.matmul(scores, v).reshape(S, -1)                       # [S, B*D]
    out = out @ params["w_hp"].T + params["b_hp"]
    out = jax.nn.sigmoid(out @ params["w_out"].T + params["b_out"])  # [S, 1]
    weighted = fused * out.reshape(-1, 1, 1)
    return out, weighted


# ---------------------------------------------------------------------------
# Summarizer forward.
# ---------------------------------------------------------------------------
def summarizer_forward(video_feats, text_feats, params, num_heads=8,
                       mask_fused=None, uniform=False):
    if video_feats.ndim == 2:
        video_feats = video_feats[None]
    if text_feats.ndim == 2:
        text_feats = text_feats[None]
    B, S, Dv = video_feats.shape
    assert B == 1, "MultiHeadSelfAttention.head_projection requires batch == 1"

    # TODO(synk): CrossModalFusion class definition was not provided with the
    # module; deterministic linear projections to hidden_size stand in so the
    # downstream (fully specified) attention path can be exercised.
    fused_text = jnp.einsum("bnt,th->bnh", text_feats, params["w_tproj"])

    if not uniform:
        fused2d, weighted2d, scores = _fused_attn_pallas(
            video_feats.reshape(S, Dv), params["w_vproj"],
            params["w_attn_row"], params["b_attn"])
        D = fused2d.shape[1]
        fused_video = fused2d.reshape(1, S, D)            # [B, N_video, hidden]
        weighted_features = weighted2d.reshape(S, 1, D)   # [N_video, B, hidden]
    else:
        fused_video = jnp.einsum("bnv,vh->bnh", video_feats, params["w_vproj"])
        scores = None
        weighted_features = jnp.transpose(fused_video, (1, 0, 2))

    # TODO(synk): VAE class definition was not provided with the module;
    # h_mu / h_log_variance / decoded_features are not computed.
    h_mu = None
    h_log_variance = None
    decoded_features = None

    return (scores, h_mu, h_log_variance, decoded_features,
            fused_video, fused_text, weighted_features)


def _xavier_normal(key, fan_out, fan_in):
    std = math.sqrt(2.0 / (fan_in + fan_out))
    return std * jax.random.normal(key, (fan_out, fan_in), dtype=jnp.float32)


if __name__ == "__main__":
    hidden = 32
    num_heads = 8
    batch = 1            # head_projection in the PyTorch module requires B == 1
    n_video, n_text = 12, 8   # n_video deliberately NOT a tile multiple (cdiv path)
    video_dim, text_dim = 64, 48

    root = jax.random.PRNGKey(0)
    k_in_v, k_in_t, k_kqv, k_hp, k_out, k_vp, k_tp = jax.random.split(root, 7)

    params = {
        # MultiHeadSelfAttention (xavier_normal weights, zero biases)
        "w_kqv": _xavier_normal(k_kqv, 3 * hidden, hidden),
        "w_hp": _xavier_normal(k_hp, hidden, hidden),
        "b_hp": jnp.zeros((hidden,), jnp.float32),
        "w_out": _xavier_normal(k_out, 1, hidden),
        "b_out": jnp.zeros((1,), jnp.float32),
        # stand-in fusion projections (see TODO above)
        "w_vproj": _xavier_normal(k_vp, hidden, video_dim).T,   # [video_dim, hidden]
        "w_tproj": _xavier_normal(k_tp, hidden, text_dim).T,    # [text_dim, hidden]
    }
    # Fold the degenerate attention chain once at setup time (not per call).
    params.update(fold_attention_params(params, hidden))

    video_feats = jax.random.normal(k_in_v, (batch, n_video, video_dim),
                                    dtype=jnp.float32)
    text_feats = jax.random.normal(k_in_t, (batch, n_text, text_dim),
                                   dtype=jnp.float32)

    (scores, h_mu, h_logvar, decoded, fused_video, fused_text,
     weighted) = summarizer_forward(video_feats, text_feats, params,
                                    num_heads=num_heads)
    jax.block_until_ready(scores)
    jax.block_until_ready(weighted)
    jax.block_until_ready(fused_video)

    # 1) In-kernel MXU projection vs. the XLA einsum (MXU f32 precision headroom).
    fused_ref_xla = jnp.einsum("bnv,vh->bnh", video_feats, params["w_vproj"])
    proj_err = float(jnp.max(jnp.abs(fused_video - fused_ref_xla)))
    assert proj_err < 2e-3, proj_err

    # 2) Folded attention chain vs. the full (un-folded) MultiHeadSelfAttention
    #    math, evaluated on the SAME fused values the kernel produced.
    fused_sbd = jnp.transpose(fused_video, (1, 0, 2))
    scores_ref, weighted_ref = _attn_reference(fused_sbd, params, num_heads)
    assert jnp.allclose(scores, scores_ref, atol=2e-5, rtol=1e-5), (
        float(jnp.max(jnp.abs(scores - scores_ref))))
    assert jnp.allclose(weighted, weighted_ref, atol=2e-5, rtol=1e-5), (
        float(jnp.max(jnp.abs(weighted - weighted_ref))))

    print("KERNEL_OK")
</pallas_src>

<mosaic_0001>
module attributes {stable_mosaic.version = 11 : i64} {
  func.func @_summarizer_kernel(%arg0: i32, %arg1: memref<1x1xf32, #tpu.memory_space<smem>>, %arg2: memref<8x64xf32, #tpu.memory_space<vmem>>, %arg3: memref<64x32xf32, #tpu.memory_space<vmem>>, %arg4: memref<1x32xf32, #tpu.memory_space<vmem>>, %arg5: memref<8x32xf32, #tpu.memory_space<vmem>>, %arg6: memref<8x32xf32, #tpu.memory_space<vmem>>, %arg7: memref<8x1xf32, #tpu.memory_space<vmem>>) attributes {dimension_semantics = [#tpu.dimension_semantics<parallel>], iteration_bounds = array<i64: 2>, scalar_prefetch = 0 : i64, scratch_operands = 0 : i64, tpu.core_type = #tpu.core_type<tc>, window_params = [{transform_indices = @transform_0, window_bounds = array<i64: 1, 1>}, {transform_indices = @transform_1, window_bounds = array<i64: 8, 64>}, {pipeline_mode = #tpu.pipeline_mode<synchronous>, transform_indices = @transform_2, window_bounds = array<i64: 64, 32>}, {pipeline_mode = #tpu.pipeline_mode<synchronous>, transform_indices = @transform_3, window_bounds = array<i64: 1, 32>}, {transform_indices = @transform_4, window_bounds = array<i64: 8, 32>}, {transform_indices = @transform_5, window_bounds = array<i64: 8, 32>}, {transform_indices = @transform_6, window_bounds = array<i64: 8, 1>}]} {
    %c0 = arith.constant 0 : index
    %c0_0 = arith.constant 0 : index
    %0 = vector.load %arg2[%c0, %c0_0] : memref<8x64xf32, #tpu.memory_space<vmem>>, vector<8x64xf32>
    %c0_1 = arith.constant 0 : index
    %c0_2 = arith.constant 0 : index
    %1 = vector.load %arg3[%c0_1, %c0_2] : memref<64x32xf32, #tpu.memory_space<vmem>>, vector<64x32xf32>
    %cst = arith.constant dense<0.000000e+00> : vector<8x32xf32>
    %2 = tpu.matmul %0, %1, %cst {dimension_numbers = #tpu.dot_dimension_numbers<[1], [0], [0], [1], [0, 0, 1, 1], [], []>, precision = #tpu.contract_precision<fp32>} : vector<8x64xf32>, vector<64x32xf32>, vector<8x32xf32> -> vector<8x32xf32>
    %c0_3 = arith.constant 0 : index
    %c0_4 = arith.constant 0 : index
    %3 = vector.load %arg5[%c0_3, %c0_4] : memref<8x32xf32, #tpu.memory_space<vmem>>, vector<8x32xf32>
    tpu.vector_store %arg5[%c0_3, %c0_4], %2 {strides = array<i32>} : memref<8x32xf32, #tpu.memory_space<vmem>>, vector<8x32xf32>,
    %c0_5 = arith.constant 0 : index
    %c0_6 = arith.constant 0 : index
    %4 = vector.load %arg4[%c0_5, %c0_6] : memref<1x32xf32, #tpu.memory_space<vmem>>, vector<1x32xf32>
    %5 = vector.broadcast %4 : vector<1x32xf32> to vector<8x32xf32>
    %6 = arith.mulf %2, %5 : vector<8x32xf32>
    %cst_7 = arith.constant dense<0.000000e+00> : vector<8xf32>
    %7 = vector.multi_reduction <add>, %6, %cst_7 [1] : vector<8x32xf32> to vector<8xf32>
    %8 = vector.shape_cast %7 : vector<8xf32> to vector<8x1xf32>
    %c0_8 = arith.constant 0 : index
    %c0_9 = arith.constant 0 : index
    %9 = memref.load %arg1[%c0_8, %c0_9] : memref<1x1xf32, #tpu.memory_space<smem>>
    %10 = vector.broadcast %9 : f32 to vector<8x1xf32>
    %11 = arith.addf %8, %10 : vector<8x1xf32>
    %cst_10 = arith.constant 0.000000e+00 : f32
    %12 = vector.broadcast %cst_10 : f32 to vector<8x1xf32>
    %13 = arith.subf %12, %11 : vector<8x1xf32>
    %14 = math.exp %13 : vector<8x1xf32>
    %cst_11 = arith.constant 1.000000e+00 : f32
    %15 = vector.broadcast %cst_11 : f32 to vector<8x1xf32>
    %16 = arith.addf %15, %14 : vector<8x1xf32>
    %17 = tpu.reciprocal %16 : vector<8x1xf32> -> vector<8x1xf32>
    %c0_12 = arith.constant 0 : index
    %c0_13 = arith.constant 0 : index
    %18 = vector.load %arg7[%c0_12, %c0_13] : memref<8x1xf32, #tpu.memory_space<vmem>>, vector<8x1xf32>
    tpu.vector_store %arg7[%c0_12, %c0_13], %17 {strides = array<i32>} : memref<8x1xf32, #tpu.memory_space<vmem>>, vector<8x1xf32>,
    %19 = vector.broadcast %17 : vector<8x1xf32> to vector<8x32xf32>
    %20 = arith.mulf %2, %19 : vector<8x32xf32>
    %c0_14 = arith.constant 0 : index
    %c0_15 = arith.constant 0 : index
    %21 = vector.load %arg6[%c0_14, %c0_15] : memref<8x32xf32, #tpu.memory_space<vmem>>, vector<8x32xf32>
    tpu.vector_store %arg6[%c0_14, %c0_15], %20 {strides = array<i32>} : memref<8x32xf32, #tpu.memory_space<vmem>>, vector<8x32xf32>,
    return
  }
  func.func @transform_0(%arg0: i32) -> (i32, i32) {
    %c0_i32 = arith.constant 0 : i32
    %c0_i32_0 = arith.constant 0 : i32
    %c0_i32_1 = arith.constant 0 : i32
    return %c0_i32, %c0_i32_0 : i32, i32
  }
  func.func @transform_1(%arg0: i32) -> (i32, i32) {
    %c0_i32 = arith.constant 0 : i32
    %c0_i32_0 = arith.constant 0 : i32
    return %arg0, %c0_i32 : i32, i32
  }
  func.func @transform_2(%arg0: i32) -> (i32, i32) {
    %c0_i32 = arith.constant 0 : i32
    %c0_i32_0 = arith.constant 0 : i32
    %c0_i32_1 = arith.constant 0 : i32
    return %c0_i32, %c0_i32_0 : i32, i32
  }
  func.func @transform_3(%arg0: i32) -> (i32, i32) {
    %c0_i32 = arith.constant 0 : i32
    %c0_i32_0 = arith.constant 0 : i32
    %c0_i32_1 = arith.constant 0 : i32
    return %c0_i32, %c0_i32_0 : i32, i32
  }
  func.func @transform_4(%arg0: i32) -> (i32, i32) {
    %c0_i32 = arith.constant 0 : i32
    %c0_i32_0 = arith.constant 0 : i32
    return %arg0, %c0_i32 : i32, i32
  }
  func.func @transform_5(%arg0: i32) -> (i32, i32) {
    %c0_i32 = arith.constant 0 : i32
    %c0_i32_0 = arith.constant 0 : i32
    return %arg0, %c0_i32 : i32, i32
  }
  func.func @transform_6(%arg0: i32) -> (i32, i32) {
    %c0_i32 = arith.constant 0 : i32
    %c0_i32_0 = arith.constant 0 : i32
    return %arg0, %c0_i32 : i32, i32
  }
}

</mosaic_0001>

<bundles_post_ra>
// kernel: tpu_custom_call.1
= control target key start
LH: loop header
LB: loop body
LE: loop exit
PB: predicated region body
PF: predicated region fallthrough
CT: control target
= control target key end

     0   :  { %s1143_s0 = inlined_call_operand.<no memory space> [shape: f32[1,1], index: 0, kind: input, shape index: {}]   ;;  %s1144_s1 = inlined_call_operand.vmem [shape: f32[12,64], index: 1, kind: input, shape index: {}]   ;;  %s1145_s2 = inlined_call_operand.vmem [shape: f32[64,32], index: 2, kind: input, shape index: {}]   ;;  %s1146_s3 = inlined_call_operand.vmem [shape: f32[1,32], index: 3, kind: input, shape index: {}]   ;;  %s1147_s4 = inlined_call_operand.hbm [shape: f32[12,32], index: 4, kind: output, shape index: {0}]   ;;  %s1148_s5 = inlined_call_operand.hbm [shape: f32[12,32], index: 5, kind: output, shape index: {1}]   ;;  %s1149_s6 = inlined_call_operand.vmem [shape: f32[12,1], index: 6, kind: output, shape index: {2}]  }
   0x1   :  { %1152 = sst [smem:[#allocation9_spill]] %s1144_s1 }
   0x2   :  { %12 = sst [smem:[#allocation2]] %s1143_s0 }
   0x3   :  { %13 = vsyncpa [#allocation4], 0 }
   0x4   :  { %15 = vsyncpa [#allocation4 + $0x1], 0 }
   0x5   :  { %16 = vsyncpa [#allocation6], 0 }
   0x6   :  { %18 = vsyncpa [#allocation6 + $0x1], 0  ;;  %s909_s23 = smov 0   ;;  %s911_s24 = smov 0  }
   0x7   :  { %s913_s25 = smov 0   ;;  %s915_s26 = smov 0  }
   0x8 LB: > { %s930_s0 = sadd.s32 4294967295, %s869_s26   ;;  %s712_s27 = sadd.s32 4294967294, %s869_s26   ;;  %s869_s26 = sphi %s915_s26, %s1161_s26   ;;  %s865_s25 = sphi %s913_s25, %s1160_s25   ;;  %s861_s24 = sphi %s911_s24, %s1159_s24   ;;  %s857_s23 = sphi %s909_s23, %s1158_s23  }
   0x9   : > { %s934_s28 = sadd.s32 1, %s869_s26   ;;  %s120_s29 = sadd.s32 1, %s865_s25 }
   0xa   : > { %s117_s30 = ssub.s32 %s869_s26, %s934_s28  ;;  %p130_p0 = scmp.ne.s32.totalorder %s865_s25, %s861_s24 }
   0xb   : > { %p118_p1 = scmp.eq.s32.totalorder %s117_s30, 0  ;;  %p131_p2 = scmp.eq.s32.totalorder %s930_s0, 1 }
   0xc   : > { %p136_p3 = scmp.ne.s32.totalorder %s861_s24, %s857_s23  ;;  %p137_p4 = scmp.eq.s32.totalorder %s712_s27, 1 }
   0xd   : > { %s945_s7 = scalar_select %p118_p1, %s865_s25, %s120_s29  }
   0xe   : > { %p947_p5 = por %p131_p2, %p130_p0  ;;  %p951_p6 = por %p137_p4, %p136_p3 }
   0xf   : > { %p715_p7 = scmp.ge.s32.totalorder %s869_s26, 1  ;;  %p223_p8 = scmp.lt.s32.totalorder %s869_s26, 3 }
  0x11   : > { %p224_p9 = pnand %p715_p7, %p223_p8 }
  0x12   : > { %p261_p10 = scmp.lt.s32.totalorder (!%p224_p9), %s930_s0, 1  ;;  %s1155_s1 = sld [smem:[#allocation9_spill]] (!%p224_p9) }
  0x13   : > { %227 = sbr.rel (%p224_p9) target bundleno = 350 (0x15e), region = 36  ;;  %s1075_s15 = sand.u32 (!%p224_p9), 1, %s861_s24  }
  0x14   : > { %s1150_s16 = sshll.u32 (!%p224_p9), %s1075_s15, 3  ;;  %s722_s20 = sshll.u32 (!%p224_p9), %s930_s0, 3 }
  0x15   : > { %s247_s19 = scalar_lea.vmem (!%p224_p9), [#allocation3], %s1150_s16  ;;  %s574_s27 = scalar_lea.hbm (!%p224_p9), %s1147_s4, %s722_s20 }
  0x16   : > { %s576_s29 = sshll.u32 (!%p224_p9), %s247_s19, 4  ;;  %s578_s30 = sshll.u32 (!%p224_p9), %s574_s27, 4  ;;  %s577_s29 = int_to_ptr.vmem [resolvable:$true] %s576_s29  ;;  %s579_s30 = int_to_ptr.hbm [resolvable:$true] %s578_s30 }
  0x17   : > { %s555_s12 = scalar_lea.sflag (!%p224_p9), [#allocation4], %s1075_s15  ;;  %s789_s13 = sshra.s32 (!%p224_p9), %s579_s30, 4  ;;  %s790_s13 = int_to_ptr.hbm [resolvable:$true] %s789_s13 }
  0x18   : > { %v277_v0 = vld [vmem:[%s1145_s2 + $0x38] sm:$0xff]  ;;  %v276_v1 = vld [vmem:[%s1145_s2 + $0x30] sm:$0xff]  ;;  %v275_v2 = vld [vmem:[%s1145_s2 + $0x28] sm:$0xff]  ;;  %s995_s10 = scalar_select %p261_p10, %s930_s0, 1  ;;  %vm278_vm0 = vcmask 523264   ;;  %vm519_vm1 = vcmask 261120  }
  0x19   : > { %v967_v3 = vand.u32 4294901760, %v277_v0  ;;  %v969_v4 = vand.u32 4294901760, %v276_v1  ;;  %v971_v5 = vand.u32 4294901760, %v275_v2  ;;  %v274_v6 = vld [vmem:[%s1145_s2 + $0x20] sm:$0xff]  ;;  %v273_v7 = vld [vmem:[%s1145_s2 + $0x18] sm:$0xff]  ;;  %v272_v8 = vld [vmem:[%s1145_s2 + $0x10] sm:$0xff]  ;;  %p796_p0 = scmp.lt.s32.totalorder %s790_s13, %s1147_s4 }
  0x1a   : > { %v982_v9 = vand.u32 4294901760, %v274_v6  ;;  %v984_v10 = vand.u32 4294901760, %v273_v7  ;;  %v986_v11 = vand.u32 4294901760, %v272_v8  ;;  %v271_v12 = vld [vmem:[%s1145_s2 + $0x8] sm:$0xff]  ;;  %v270_v13 = vld [vmem:[%s1145_s2] sm:$0xff]  ;;  %s1151_s11 = sshll.u32 %s995_s10, 3 }
  0x1b   : > { %291 = vmatpush.msra.mxu0 %v967_v3  ;;  %v999_v14 = vsub.f32 %v277_v0, %v967_v3  ;;  %v1002_v15 = vsub.f32 %v276_v1, %v969_v4  ;;  %423 = vmatpush.msra.mxu3 %v967_v3  ;;  %v1006_v16 = vsub.f32 %v275_v2, %v971_v5  ;;  %v1008_v17 = vand.u32 4294901760, %v271_v12  ;;  %s264_s14 = scalar_lea.vmem %s1155_s1, %s1151_s11  ;;  %v770_v0 = vld [vmem:[%s1146_s3] ss:$0 sm:$0xff]  ;;  %s795_s16 = scalar_lea.hbm %s1147_s4, 16 }
  0x1c   : > { %v1011_v18 = vsub.f32 %v274_v6, %v982_v9  ;;  %v1014_v19 = vsub.f32 %v273_v7, %v984_v10  ;;  %v1017_v20 = vsub.f32 %v272_v8, %v986_v11  ;;  %v1025_v24 = vand.u32 4294901760, %v270_v13  ;;  %v269_v32 = vld [vmem:[%s264_s14] sm:$0xff]  ;;  %s791_s14 = scalar_lea.hbm %s790_s13, 8 }
  0x1d   : > { %293 = vmatpush.msra.mxu0 %v969_v4  ;;  %v325_v21 = vand.u32 4294901760, %v999_v14  ;;  %386 = vmatpush.msra.mxu2 %v999_v14  ;;  %v331_v22 = vand.u32 4294901760, %v1002_v15  ;;  %v337_v23 = vand.u32 4294901760, %v1006_v16  ;;  %v1035_v26 = vsub.f32 %v271_v12, %v1008_v17  ;;  %p792_p11 = scmp.ne.s32.totalorder %s790_s13, %s791_s14  ;;  %p797_p1 = scmp.lt.s32.totalorder %s795_s16, %s791_s14 }
  0x1e   : > { %425 = vmatpush.msra.mxu3 %v969_v4  ;;  %v343_v25 = vand.u32 4294901760, %v1011_v18  ;;  %v349_v30 = vand.u32 4294901760, %v1014_v19  ;;  %v355_v31 = vand.u32 4294901760, %v1017_v20  ;;  %v366_v36 = vsub.f32 %v270_v13, %v1025_v24 }
  0x1f   : > { %295 = vmatpush.msra.mxu0 %v971_v5  ;;  %v326_v27 = vsub.f32 %v999_v14, %v325_v21  ;;  %v332_v28 = vsub.f32 %v1002_v15, %v331_v22  ;;  %389 = vmatpush.msra.mxu2 %v1002_v15  ;;  %v338_v29 = vsub.f32 %v1006_v16, %v337_v23  ;;  %v361_v39 = vand.u32 4294901760, %v1035_v26  ;;  %p793_p12 = pnand %p792_p11, %p947_p5  ;;  %p798_p2 = por %p797_p1, %p796_p0 }
  0x20   : > { %427 = vmatpush.msra.mxu3 %v971_v5  ;;  %v344_v35 = vsub.f32 %v1011_v18, %v343_v25  ;;  %v350_v38 = vsub.f32 %v1014_v19, %v349_v30  ;;  %v280_v40 = vsel %vm278_vm0, %v269_v32, 0  ;;  %v356_v43 = vsub.f32 %v1017_v20, %v355_v31 }
  0x21   : > { %v327_v33 = vand.u32 4294901760, %v326_v27  ;;  %297 = vmatpush.msra.mxu0 %v982_v9  ;;  %v333_v34 = vand.u32 4294901760, %v332_v28  ;;  %392 = vmatpush.msra.mxu2 %v1006_v16  ;;  %v339_v37 = vand.u32 4294901760, %v338_v29  ;;  %v306_v41 = vand.u32 4294901760, %v280_v40  ;;  %p794_p13 = pneg %p793_p12 }
  0x22   : > { %429 = vmatpush.msra.mxu3 %v982_v9  ;;  %v345_v42 = vand.u32 4294901760, %v344_v35  ;;  %v367_v44 = vand.u32 4294901760, %v366_v36  ;;  %v351_v46 = vand.u32 4294901760, %v350_v38  ;;  %v362_v47 = vsub.f32 %v1035_v26, %v361_v39 }
  0x23   : > { %328 = vmatpush.msra.mxu1 %v327_v33  ;;  %299 = vmatpush.msra.mxu0 %v984_v10  ;;  %v307_v45 = vsub.f32 %v280_v40, %v306_v41  ;;  %v357_v49 = vand.u32 4294901760, %v356_v43  ;;  %p799_p3 = pnand %p798_p2, %p794_p13 }
  0x24   : > { %395 = vmatpush.msra.mxu2 %v1011_v18  ;;  %431 = vmatpush.msra.mxu3 %v984_v10  ;;  %v368_v50 = vsub.f32 %v366_v36, %v367_v44  ;;  %v363_v52 = vand.u32 4294901760, %v362_v47 }
  0x25   : > { %334 = vmatpush.msra.mxu1 %v333_v34  ;;  %301 = vmatpush.msra.mxu0 %v986_v11  ;;  %v308_v48 = vand.u32 4294901760, %v307_v45 }
  0x26   : > { %398 = vmatpush.msra.mxu2 %v1014_v19  ;;  %433 = vmatpush.msra.mxu3 %v986_v11  ;;  %v369_v54 = vand.u32 4294901760, %v368_v50 }
  0x27   : > { %340 = vmatpush.msra.mxu1 %v339_v37  ;;  %303 = vmatpush.msra.mxu0 %v1008_v17  ;;  %v309_v51 = vsub.f32 %v307_v45, %v308_v48 }
  0x28   : > { %401 = vmatpush.msra.mxu2 %v1017_v20  ;;  %435 = vmatpush.msra.mxu3 %v1008_v17 }
  0x29   : > { %346 = vmatpush.msra.mxu1 %v345_v42  ;;  %305 = vmatpush.msra.mxu0 %v1025_v24  ;;  %v310_v53 = vand.u32 4294901760, %v309_v51 }
  0x2a   : > { %404 = vmatpush.msra.mxu2 %v1035_v26  ;;  %437 = vmatpush.msra.mxu3 %v1025_v24 }
  0x2b   : > { %456 = vmatpush.msrb.mxu0 %v325_v21  ;;  %352 = vmatpush.msra.mxu1 %v351_v46 }
  0x2c   : > { %407 = vmatpush.msra.mxu2 %v366_v36  ;;  %441 = vmatmul.f32.vlgmr.msra.gmra.mxu3 %v308_v48 }
  0x2d   : > { %460 = vmatpush.msrb.mxu0 %v331_v22  ;;  %358 = vmatpush.msra.mxu1 %v357_v49 }
  0x2e   : > { %410 = vmatmul.f32.vlgmr.msra.gmra.mxu2 %v307_v45  ;;  %311 = vmatmul.f32.vlgmr.msra.gmra.mxu0 %v310_v53 }
  0x2f   : > { %464 = vmatpush.msrb.mxu0 %v337_v23  ;;  %364 = vmatpush.msra.mxu1 %v363_v52 }
  0x31   : > { %468 = vmatpush.msrb.mxu0 %v343_v25  ;;  %370 = vmatpush.msra.mxu1 %v369_v54 }
  0x32   : > { %372 = vmatmul.f32.vlgmr.msra.gmra.mxu1 %v306_v41 }
  0x33   : > { %499 = vmatpush.msrb.mxu1 %v967_v3  ;;  %472 = vmatpush.msrb.mxu0 %v349_v30 }
  0x35   : > { %501 = vmatpush.msrb.mxu1 %v969_v4  ;;  %476 = vmatpush.msrb.mxu0 %v355_v31 }
  0x37   : > { %503 = vmatpush.msrb.mxu1 %v971_v5  ;;  %480 = vmatpush.msrb.mxu0 %v361_v39 }
  0x39   : > { %505 = vmatpush.msrb.mxu1 %v982_v9  ;;  %484 = vmatpush.msrb.mxu0 %v367_v44 }
  0x3a   : > { %486 = vmatmul.f32.vlgmr.msrb.gmra.mxu0 %v306_v41 }
  0x3b   : > { %507 = vmatpush.msrb.mxu1 %v984_v10 }
  0x3d   : > { %509 = vmatpush.msrb.mxu1 %v986_v11 }
  0x3f   : > { %511 = vmatpush.msrb.mxu1 %v1008_v17 }
  0x41   : > { %513 = vmatpush.msrb.mxu1 %v1025_v24 }
  0x42   : > { %515 = vmatmul.f32.vlgmr.msrb.gmra.mxu1 %v306_v41 }
  0xab   : > { %v312_v55 = vpop.f32.mrf.mxu0 }
  0xaf   : > { %v373_v56 = vpop.f32.mrf.mxu1  ;;  %v442_v60 = vpop.f32.mrf.mxu3 }
  0xb0   : > { %v374_v57 = vadd.f32 %v373_v56, %v312_v55 }
  0xb1   : > { %v411_v58 = vpop.f32.mrf.mxu2 }
  0xb2   : > { %v412_v59 = vadd.f32 %v411_v58, %v374_v57 }
  0xb4   : > { %v443_v61 = vadd.f32 %v442_v60, %v412_v59 }
  0xb7   : > { %v487_v62 = vpop.f32.mrf.mxu0 }
  0xb8   : > { %v488_v63 = vadd.f32 %v487_v62, %v443_v61 }
  0xbf   : > { %v516_v1 = vpop.f32.mrf.mxu1 }
  0xc0   : > { %v517_v2 = vadd.f32 %v516_v1, %v488_v63 }
  0xc2   : > { %v525_v3 = vmul.f32 %v770_v0, %v517_v2  ;;  %520 = vst.msk [vmem:[%s247_s19] sm:$0xff] %vm519_vm1, %v517_v2 }
  0xc4   : > { %v526_v4 = vsel %vm519_vm1, %v525_v3, 0.0 }
  0xc5   : > { %527 = vadd.xlane.f32.xlu0 %v526_v4 }
  0xc6   : > { %802 = shalt.err (!%p799_p3)
}
  0xc7   : > { %726 = dma.vmem_to_hbm [thread:$0]  (%p947_p5), %s577_s29, 128, %s579_s30, %s555_s12   ;;  %vm550_vm5 = vcmask 7168  }
  0xc8   : > { %s529_s19 = sld [smem:[#allocation2]]  ;;  %s588_s16 = scalar_lea.hbm %s1148_s5, %s722_s20 }
  0xc9   : > { %s1156_s21 = sshll.u32 %s995_s10, 3  ;;  %s1157_s30 = sshll.u32 %s1075_s15, 3 }
  0xca   : > { %s268_s29 = scalar_lea.vmem %s1149_s6, %s1156_s21  ;;  %s254_s12 = scalar_lea.vmem [#allocation5], %s1157_s30 }
  0xcb   : > { %s590_s13 = sshll.u32 %s254_s12, 4  ;;  %s592_s0 = sshll.u32 %s588_s16, 4  ;;  %s591_s13 = int_to_ptr.vmem [resolvable:$true] %s590_s13  ;;  %s593_s0 = int_to_ptr.hbm [resolvable:$true] %s592_s0 }
  0xcc   : > { %s560_s10 = scalar_lea.sflag [#allocation6], %s1075_s15  ;;  %s817_s20 = sshra.s32 %s593_s0, 4  ;;  %s818_s20 = int_to_ptr.hbm [resolvable:$true] %s817_s20 }
  0xcd   : > { %s819_s14 = scalar_lea.hbm %s818_s20, 8  ;;  %p824_p9 = scmp.lt.s32.totalorder %s818_s20, %s1148_s5 }
  0xce   : > { %v530_v5 = vstv %s529_s19  ;;  %p820_p4 = scmp.ne.s32.totalorder %s818_s20, %s819_s14  ;;  %s823_s19 = scalar_lea.hbm %s1148_s5, 16 }
  0xcf   : > { %p825_p10 = scmp.lt.s32.totalorder %s823_s19, %s819_s14 }
  0xd0   : > { %p821_p7 = pnand %p820_p4, %p947_p5 }
  0xd1   : > { %p826_p11 = por %p825_p10, %p824_p9 }
  0xd2   : > { %p822_p8 = pneg %p821_p7 }
  0xd4   : > { %p827_p12 = pnand %p826_p11, %p822_p8 }
 0x138   : > { %v528_v6 = vpop.xlane.xlu0 %527 }
 0x139   : > { %v531_v7 = vadd.f32 %v530_v5, %v528_v6 }
 0x13b   : > { %v532_v8 = vsub.f32 0.0, %v531_v7 }
 0x13d   : > { %v533_v9 = vmul.f32 1.442695, %v532_v8 }
 0x13f   : > { %771 = vpow2.f32 %v533_v9 }
 0x145   : > { %v772_v10 = vpop.eup %771 }
 0x146   : > { %v535_v11 = vadd.f32 1.0, %v772_v10 }
 0x148   : > { %773 = vrcp.f32 %v535_v11  ;;  %v547_v15 = vand.u32 2147483648, %v535_v11  ;;  %v545_v17 = vand.u32 2147483647, %v535_v11  ;;  %vm541_vm3 = vweird.f32 %v535_v11 }
 0x14a   : > { %v548_v19 = vor.u32 1.1754944e-38, %v547_v15  ;;  %vm546_vm6 = vcmp.eq.f32.partialorder %v545_v17, 8.507059e+37 }
 0x14e   : > { %v774_v12 = vpop.eup %773 }
 0x14f   : > { %v537_v13 = vmul.f32 %v774_v12, %v535_v11  ;;  %vm542_vm2 = vweird.f32 %v774_v12 }
 0x150   : > { %vm543_vm4 = vmor %vm541_vm3, %vm542_vm2 }
 0x151   : > { %v538_v14 = vsub.f32 1.0, %v537_v13 }
 0x153   : > { %v539_v16 = vmul.f32 %v774_v12, %v538_v14 }
 0x155   : > { %v540_v18 = vadd.f32 %v774_v12, %v539_v16 }
 0x157   : > { %v544_v20 = vsel %vm543_vm4, %v774_v12, %v540_v18 }
 0x158   : > { %v549_v21 = vsel %vm546_vm6, %v548_v19, %v544_v20 }
 0x159   : > { %551 = vst.msk [vmem:[%s268_s29] sm:$0xff] %vm550_vm5, %v549_v21  ;;  %v552_v22 = vmul.f32 %v549_v21, %v517_v2 }
 0x15b   : > { %553 = vst.msk [vmem:[%s254_s12] sm:$0xff] %vm519_vm1, %v552_v22 }
 0x15c   : > { %830 = shalt.err (!%p827_p12)
}
 0x15d   : > { %727 = dma.vmem_to_hbm [thread:$0]  (%p947_p5), %s591_s13, 128, %s593_s0, %s560_s10  }
 0x15e PF: > { %p737_p13 = scmp.ge.s32.totalorder %s869_s26, 2  ;;  %s607_s15 = sand.u32 1, %s857_s23  }
 0x15f   : > { %s608_s16 = scalar_lea.sflag [#allocation4], %s607_s15 }
 0x160   : > { %p731_p0 = pnand %p737_p13, %p951_p6 }
 0x162   : > { %p732_p1 = pneg %p731_p0 }
 0x164   : > { %848 = dma.done.wait (%p732_p1), %s608_s16, 128  }
 0x165   : > { %850 = vsyncadd (%p732_p1), %s608_s16, 4294967168  ;;  %s618_s21 = scalar_lea.sflag [#allocation6], %s607_s15 }
 0x166   : > { %852 = dma.done.wait (%p732_p1), %s618_s21, 128  }
 0x167   : > { %854 = vsyncadd (%p732_p1), %s618_s21, 4294967168  ;;  %p21_p5 = scmp.ge.s32.totalorder %s934_s28, 4   ;;  %s1158_s23 = smov %s861_s24 }
 0x168   : > { %s1159_s24 = smov %s865_s25  ;;  %s1160_s25 = smov %s945_s7 }
 0x169   : > { %s1161_s26 = smov %s934_s28  ;;  %23 = sbr.rel (!%p21_p5) target bundleno = 8 (0x8), region = 100 }
 0x16e   :  { %631 = vsyncpa [#allocation4], 1 }
 0x16f   :  { %633 = vsyncpa [#allocation4 + $0x1], 1 }
 0x170   :  { %634 = vsyncpa [#allocation6], 1 }
 0x171   :  { %636 = vsyncpa [#allocation6 + $0x1], 1 }

</bundles_post_ra>
